<compile_context>
chip_gen: v6e
topology: v6e:2x2x1
jax: 0.10.0
libtpu: 0.0.40
codegen_flags: <defaults>
</compile_context>

<pallas_src>
import functools
import math

import jax
import jax.numpy as jnp
from jax.experimental import pallas as pl
from jax.experimental.pallas import tpu as pltpu


# --------------------------- hardware-aware tiling ---------------------------


def _cdiv(a, b):
  return -(-a // b)


def _vmem_capacity_bytes():
  try:
    return int(pltpu.get_tpu_info().vmem_capacity_bytes)
  except Exception:  # off-TPU tracing / older API: assume v7x's 64 MiB per TC
    return 64 * 1024 * 1024


def _step_budget_bytes():
  # Per-grid-step working-set target (single buffer): bigger on 128 MiB parts
  # (v5e/v6e), tighter on v7x (64 MiB per TensorCore).
  cap = _vmem_capacity_bytes()
  return int(min(24 * 1024 * 1024, cap // 6))


def _pick_row_tile(n_rows, bytes_per_row, min_steps=4, max_tile=4096):
  """Multiple-of-8 row tile; grids use cdiv so no divisibility is required."""
  if n_rows < 8:
    return n_rows                                   # full-extent block: legal
  budget = _step_budget_bytes()
  tile = max(8, min(max_tile, budget // max(int(bytes_per_row), 1)))
  tile = (tile // 8) * 8
  # Keep at least ~min_steps grid steps when there are enough rows so both of
  # v7x's TensorCores get work on the "parallel" grid axis.
  if n_rows >= min_steps * 8:
    cap_steps = max(8, (_cdiv(n_rows, min_steps) // 8) * 8)
    tile = min(tile, cap_steps)
  tile = min(tile, (n_rows // 8) * 8)               # never exceed row extent
  return max(tile, 8)


def _compiler_params(step_bytes, fixed_bytes=0):
  # Double-buffer factor applied exactly once here (not in bytes_per_row).
  cap = _vmem_capacity_bytes()
  need = 2 * int(step_bytes) + int(fixed_bytes) + (4 << 20)
  limit = int(min(max(need, 16 << 20), int(cap * 0.6)))
  return pltpu.CompilerParams(dimension_semantics=("parallel",),
                              vmem_limit_bytes=limit)


# ------------------------------ Pallas kernels ------------------------------


def _swap_halves_lanes(x, f):
  """[a | b] -> [b | a] along the lane (last) axis; each half is f wide."""
  if (2 * f) % 128 == 0:
    return pltpu.roll(x, shift=f, axis=-1)   # XLU rotate: off the store path
  return jnp.concatenate([x[:, f:], x[:, :f]], axis=-1)


def _tie_interleaved_kernel(x_ref, o_ref, *, f, concat_origin):
  """Lane-dense interleaved tie: x_ref is (tile, 2F) literal pairs."""
  x = x_ref[...]
  rc = _swap_halves_lanes(x, f)
  o_ref[...] = jnp.concatenate([x, rc], axis=-1) if concat_origin else rc


def _tie_halves_kernel(top_ref, bot_ref, o_ref, *, concat_origin):
  """Non-interleaved tie: reads each half once, writes both output halves."""
  a = top_ref[0]
  b = bot_ref[0]
  if concat_origin:
    o_ref[0] = jnp.concatenate([a, b], axis=-1)
    o_ref[1] = jnp.concatenate([b, a], axis=-1)
  else:
    o_ref[0] = b
    o_ref[1] = a


def _gin_fused_lupdate_kernel(scale_ref, x_ref, h_ref, w0_ref, b0_ref,
                              w1_ref, b1_ref, g_ref, gamma_ref, beta_ref,
                              o_ref, *, nonlin):
  """Fused GIN literal update: pre-add, tie (folded into W0), MLP, LayerNorm.

  Row layout: p pairs per row, each pair occupies 2d lanes = [a | b].
  w0_ref already contains the tie's swap folded in (per pair the columns are
  [z_a-row | z_b-row]); w1_ref / g_ref are block-diagonal so every 'd'-wide
  lane group stays independent.  LayerNorm group statistics are computed with
  the block-diagonal averaging matmul g_ref (keeps everything lane-resident,
  no reshape / cross-lane reductions).
  """
  s = scale_ref[0, 0]
  pre = x_ref[...].astype(jnp.float32) * s + h_ref[...].astype(jnp.float32)
  z = jnp.dot(pre, w0_ref[...], preferred_element_type=jnp.float32) + b0_ref[...]
  y = jnp.tanh(z) if nonlin == "tanh" else jnp.maximum(z, 0.0)
  o = jnp.dot(y, w1_ref[...], preferred_element_type=jnp.float32) + b1_ref[...]
  mu = jnp.dot(o, g_ref[...], preferred_element_type=jnp.float32)
  c = o - mu
  var = jnp.dot(c * c, g_ref[...], preferred_element_type=jnp.float32)
  o_ref[...] = (c * jax.lax.rsqrt(var + 1e-5) * gamma_ref[...]
                + beta_ref[...]).astype(o_ref.dtype)


# ------------------------------- wrappers -----------------------------------


@functools.partial(jax.jit, static_argnames=("interleaved", "concat_origin"))
def tie_literals_pallas(embs, interleaved: bool = True,
                        concat_origin: bool = True):
  """Pallas implementation of DGLEncoder.tie_literals."""
  n2, f = embs.shape
  assert n2 % 2 == 0, "number of literal embeddings must be even"
  itemsize = jnp.dtype(embs.dtype).itemsize

  if interleaved:
    n = n2 // 2
    x2 = embs.reshape(n, 2 * f)                 # lane-dense pair packing
    out_w = 4 * f if concat_origin else 2 * f
    bytes_per_row = (2 * f + out_w) * itemsize
    tile = _pick_row_tile(n, bytes_per_row)
    out2 = pl.pallas_call(
        functools.partial(_tie_interleaved_kernel, f=f,
                          concat_origin=concat_origin),
        out_shape=jax.ShapeDtypeStruct((n, out_w), embs.dtype),
        grid=(pl.cdiv(n, tile),),
        in_specs=[pl.BlockSpec((tile, 2 * f), lambda i: (i, 0))],
        out_specs=pl.BlockSpec((tile, out_w), lambda i: (i, 0)),
        compiler_params=_compiler_params(bytes_per_row * tile),
    )(x2)
    return out2.reshape(n2, out_w // 2)

  # Non-interleaved: free reshape to (2, half, w); one grid step handles the
  # matching block of BOTH halves, so each input element is read exactly once.
  half, w = n2 // 2, f
  x3 = embs.reshape(2, half, w)
  if (not concat_origin) and w % 128 != 0 and (half * w) % 128 == 0:
    # Pure copy: view each half fully lane-dense.
    half, w = (half * w) // 128, 128
    x3 = x3.reshape(2, half, w)
  out_w = 2 * w if concat_origin else w
  bytes_per_row = 2 * (w + out_w) * itemsize    # both halves per grid row
  tile = _pick_row_tile(half, bytes_per_row)
  out3 = pl.pallas_call(
      functools.partial(_tie_halves_kernel, concat_origin=concat_origin),
      out_shape=jax.ShapeDtypeStruct((2, half, out_w), embs.dtype),
      grid=(pl.cdiv(half, tile),),
      in_specs=[pl.BlockSpec((1, tile, w), lambda i: (0, i, 0)),
                pl.BlockSpec((1, tile, w), lambda i: (1, i, 0))],
      out_specs=pl.BlockSpec((2, tile, out_w), lambda i: (0, i, 0)),
      compiler_params=_compiler_params(bytes_per_row * tile),
  )(x3, x3)
  return out3.reshape(n2, 2 * f if concat_origin else f)


@functools.partial(jax.jit, static_argnames=("nonlin",))
def gin_fused_literal_update(literal_embs, h, epsilon, params, nonlin="relu"):
  """(eps+1)*lit + h -> tie_literals -> Linear -> nonlin -> Linear -> LN."""
  n2, d = literal_embs.shape
  assert n2 % 2 == 0
  n = n2 // 2
  f32 = jnp.float32
  w0, b0 = params["w0"], params["b0"]             # (2d, dh), (dh,)
  w1, b1 = params["w1"], params["b1"]             # (dh, d),  (d,)
  gamma, beta = params["ln_g"], params["ln_b"]    # (d,),     (d,)
  dh = w0.shape[1]

  # Pairs-per-row packing so streamed slabs are 128-lane dense (d=32 -> p=2).
  p = 1
  if 2 * d < 128 and 128 % (2 * d) == 0:
    cand = 128 // (2 * d)
    if n % cand == 0:
      p = cand
  rows = n // p
  pin, pmid = p * 2 * d, p * 2 * dh

  x2 = literal_embs.reshape(rows, pin)
  h2 = h.reshape(rows, pin)

  # Fold tie_literals' swap into the first GEMM:
  # per pair, [a|b] @ w_pair = [ [a|b]@W0 , [b|a]@W0 ].
  w0t, w0b = w0[:d].astype(f32), w0[d:].astype(f32)
  w_pair = jnp.concatenate(
      [jnp.concatenate([w0t, w0b], axis=1),
       jnp.concatenate([w0b, w0t], axis=1)], axis=0)            # (2d, 2dh)
  eye_p = jnp.eye(p, dtype=f32)
  eye_2p = jnp.eye(2 * p, dtype=f32)
  w0_full = jnp.kron(eye_p, w_pair)                             # (pin, pmid)
  w1_full = jnp.kron(eye_2p, w1.astype(f32))                    # (pmid, pin)
  g_full = jnp.kron(eye_2p, jnp.full((d, d), 1.0 / d, f32))     # (pin, pin)
  b0_full = jnp.tile(b0.astype(f32), 2 * p).reshape(1, pmid)
  b1_full = jnp.tile(b1.astype(f32), 2 * p).reshape(1, pin)
  gamma_full = jnp.tile(gamma.astype(f32), 2 * p).reshape(1, pin)
  beta_full = jnp.tile(beta.astype(f32), 2 * p).reshape(1, pin)
  scale = jnp.reshape(jnp.asarray(epsilon, f32) + 1.0, (1, 1))

  itemsize = jnp.dtype(literal_embs.dtype).itemsize
  bytes_per_row = 3 * pin * itemsize                     # x + h in, out
  fixed = 2 * 4 * (pin * pmid + pmid * pin + pin * pin + 4 * max(pin, pmid))
  tile = _pick_row_tile(rows, bytes_per_row)

  out = pl.pallas_call(
      functools.partial(_gin_fused_lupdate_kernel, nonlin=nonlin),
      out_shape=jax.ShapeDtypeStruct((rows, pin), literal_embs.dtype),
      grid=(pl.cdiv(rows, tile),),
      in_specs=[
          pl.BlockSpec(memory_space=pltpu.MemorySpace.SMEM),   # scale (eps+1)
          pl.BlockSpec((tile, pin), lambda i: (i, 0)),         # literals
          pl.BlockSpec((tile, pin), lambda i: (i, 0)),         # h (c2l aggr.)
          pl.BlockSpec((pin, pmid), lambda i: (0, 0)),         # W0 (tie folded)
          pl.BlockSpec((1, pmid), lambda i: (0, 0)),           # b0
          pl.BlockSpec((pmid, pin), lambda i: (0, 0)),         # W1 block-diag
          pl.BlockSpec((1, pin), lambda i: (0, 0)),            # b1
          pl.BlockSpec((pin, pin), lambda i: (0, 0)),          # group-mean mat
          pl.BlockSpec((1, pin), lambda i: (0, 0)),            # LN gamma
          pl.BlockSpec((1, pin), lambda i: (0, 0)),            # LN beta
      ],
      out_specs=pl.BlockSpec((tile, pin), lambda i: (i, 0)),
      compiler_params=_compiler_params(bytes_per_row * tile, fixed),
  )(scale, x2, h2, w0_full, b0_full, w1_full, b1_full, g_full,
    gamma_full, beta_full)
  return out.reshape(n2, d)


# --------------------------- JAX module definitions --------------------------


def _init_mlp(key, dims, layernorm=False, dtype=jnp.float32):
  # TODO(synk): MLPModel internals are not in the provided spec; assumed
  # Linear -> nonlin -> Linear (+ final LayerNorm when layernorm=True).
  d_in, d_hid, d_out = dims
  k0, k1 = jax.random.split(key)
  params = {
      "w0": jax.random.normal(k0, (d_in, d_hid), dtype) * (1.0 / math.sqrt(d_in)),
      "b0": jnp.zeros((d_hid,), dtype),
      "w1": jax.random.normal(k1, (d_hid, d_out), dtype) * (1.0 / math.sqrt(d_hid)),
      "b1": jnp.zeros((d_out,), dtype),
  }
  if layernorm:
    params["ln_g"] = jnp.ones((d_out,), dtype)
    params["ln_b"] = jnp.zeros((d_out,), dtype)
  return params


def _apply_mlp(params, x, non_linearity, layernorm=False):
  hp = jax.lax.Precision.HIGHEST
  h = non_linearity(jnp.dot(x, params["w0"], precision=hp) + params["b0"])
  h = jnp.dot(h, params["w1"], precision=hp) + params["b1"]
  if layernorm:
    mu = jnp.mean(h, axis=-1, keepdims=True)
    var = jnp.var(h, axis=-1, keepdims=True)
    h = (h - mu) * jax.lax.rsqrt(var + 1e-5) * params["ln_g"] + params["ln_b"]
  return h


_DEFAULT_SETTINGS = {
    "vlabel_dim": 4, "clabel_dim": 4, "vemb_dim": 32, "cemb_dim": 32,
    "max_iters": 2, "non_linearity": "relu",
    "sharp_emb_dim": 32, "cp_num_layers": 2,
}

_NONLIN = {"relu": jax.nn.relu, "torch.relu": jax.nn.relu, "F.relu": jax.nn.relu,
           "tanh": jnp.tanh, "torch.tanh": jnp.tanh, "F.tanh": jnp.tanh}


def _nonlin_name(s):
  s = str(s).lower()
  if "tanh" in s:
    return "tanh"
  if "relu" in s:
    return "relu"
  return "other"


class DGLEncoder:
  """JAX/Pallas port of the PyTorch DGLEncoder base class (config only)."""

  def __init__(self, settings=None, **kwargs):
    self.settings = dict(_DEFAULT_SETTINGS)
    if settings:
      self.settings.update(settings)
    self.vlabel_dim = self.settings["vlabel_dim"]
    self.clabel_dim = self.settings["clabel_dim"]
    self.vemb_dim = self.settings["vemb_dim"]
    self.cemb_dim = self.settings["cemb_dim"]
    self.max_iters = self.settings["max_iters"]
    self.non_linearity = _NONLIN.get(self.settings["non_linearity"], jax.nn.relu)
    self.nonlin_name = _nonlin_name(self.settings["non_linearity"])

  @staticmethod
  def tie_literals(embs, interleaved=True, concat_origin=True):
    return tie_literals_pallas(embs, interleaved=interleaved,
                               concat_origin=concat_origin)

  def forward(self, G, feat_dict, **kwargs):
    raise NotImplementedError

  def output_size(self):
    raise NotImplementedError


class GINEncoder(DGLEncoder):
  """GIN encoder over the literal/clause bipartite CNF graph."""

  def __init__(self, settings=None, key=None, **kwargs):
    super().__init__(settings=settings, **kwargs)
    self.d = self.settings["sharp_emb_dim"]
    self.num_layers = self.settings["cp_num_layers"]
    key = key if key is not None else jax.random.PRNGKey(0)
    keys = jax.random.split(key, 2 + 2 * self.max_iters)
    self.epsilon = jnp.asarray([0.2], dtype=jnp.float32)
    if self.vlabel_dim:
      self.literal_features_layer = _init_mlp(keys[0], [self.vlabel_dim, self.d, self.d])
    else:
      self.L_init = jax.random.normal(keys[0], (self.d,), jnp.float32)
    if self.clabel_dim:
      self.clause_features_layer = _init_mlp(keys[1], [self.clabel_dim, self.d, self.d])
    else:
      self.C_init = jax.random.normal(keys[1], (self.d,), jnp.float32)
    self.L_update, self.C_update = [], []
    for i in range(self.max_iters):
      self.L_update.append(_init_mlp(keys[2 + 2 * i], [2 * self.d, self.d, self.d],
                                     layernorm=True))
      self.C_update.append(_init_mlp(keys[3 + 2 * i], [self.d, self.d, self.d],
                                     layernorm=True))

  def forward(self, adj_l2c, literal_feats=None, clause_feats=None,
              n_literals=None, n_clauses=None, use_pallas=True):
    # adj_l2c: dense (n_clauses, n_literals) 0/1 incidence matrix standing in
    # for the DGL heterograph edges; fn.copy_src + fn.sum == matmul with it.
    d = self.d
    hp = jax.lax.Precision.HIGHEST
    inv_sqrt_d = 1.0 / math.sqrt(d)
    if self.vlabel_dim:
      literals = _apply_mlp(self.literal_features_layer,
                            literal_feats * inv_sqrt_d, self.non_linearity)
    else:
      literals = jnp.broadcast_to(self.L_init, (n_literals, d)) * inv_sqrt_d
    if self.clabel_dim:
      clauses = _apply_mlp(self.clause_features_layer,
                           clause_feats * inv_sqrt_d, self.non_linearity)
    else:
      clauses = jnp.broadcast_to(self.C_init, (n_clauses, d)) * inv_sqrt_d

    eps = self.epsilon[0]
    for i in range(self.max_iters):
      h_c = jnp.dot(adj_l2c, literals, precision=hp)        # l2c sum aggregate
      pre_cembs = (eps + 1.0) * clauses + h_c
      clauses = _apply_mlp(self.C_update[i], pre_cembs, self.non_linearity,
                           layernorm=True)
      # c2l sum aggregate == adj^T @ clauses; einsum keeps adj untransposed.
      h_l = jnp.einsum("cl,cd->ld", adj_l2c, clauses, precision=hp)
      if use_pallas and self.nonlin_name in ("relu", "tanh"):
        # Fully fused Pallas literal update (pre-add + tie + MLP + LayerNorm).
        literals = gin_fused_literal_update(literals, h_l, eps,
                                            self.L_update[i],
                                            nonlin=self.nonlin_name)
      elif use_pallas:
        pre = (eps + 1.0) * literals + h_l
        pre_lembs = tie_literals_pallas(pre, True, True)
        literals = _apply_mlp(self.L_update[i], pre_lembs, self.non_linearity,
                              layernorm=True)
      else:
        pre = (eps + 1.0) * literals + h_l
        pre_lembs = tie_literals_ref(pre, True, True)
        literals = _apply_mlp(self.L_update[i], pre_lembs, self.non_linearity,
                              layernorm=True)
    return literals, clauses

  def output_size(self):
    return self.d


# -------------------------------- reference ---------------------------------


def tie_literals_ref(embs, interleaved=True, concat_origin=True):
  n2, f = embs.shape
  if interleaved:
    z = embs.reshape(-1, 2, f)
    rc = z[:, ::-1, :].reshape(-1, f)
  else:
    n = n2 // 2
    rc = jnp.concatenate([embs[n:], embs[:n]], axis=0)
  if concat_origin:
    rc = jnp.concatenate([embs, rc], axis=1)
  return rc


# ----------------------------------- main ------------------------------------


if __name__ == "__main__":
  key = jax.random.PRNGKey(0)
  (k_enc, k_lf, k_cf, k_adj, k_embs, k_lf2, k_cf2, k_adj2) = jax.random.split(key, 8)

  settings = dict(_DEFAULT_SETTINGS)          # d=32, 2 iters, relu
  enc = GINEncoder(settings=settings, key=k_enc)

  ok = True

  # Full GIN forward using the fused Pallas literal-update kernel.
  #  (8 vars  -> 2 pairs packed per row, 128-lane dense; 9 vars -> p=1 and a
  #   partial last block, exercising the cdiv grid path.)
  cases = [(8, 12, k_lf, k_cf, k_adj), (9, 10, k_lf2, k_cf2, k_adj2)]
  for n_vars, n_clauses, kl, kc, ka in cases:
    n_lits = 2 * n_vars
    literal_feats = jax.random.normal(kl, (n_lits, settings["vlabel_dim"]),
                                      jnp.float32)
    clause_feats = jax.random.normal(kc, (n_clauses, settings["clabel_dim"]),
                                     jnp.float32)
    adj = (jax.random.uniform(ka, (n_clauses, n_lits)) < 0.3).astype(jnp.float32)

    lit_p, cl_p = enc.forward(adj, literal_feats, clause_feats, use_pallas=True)
    lit_p, cl_p = jax.block_until_ready((lit_p, cl_p))
    lit_r, cl_r = enc.forward(adj, literal_feats, clause_feats, use_pallas=False)
    ok &= bool(jnp.allclose(lit_p, lit_r, atol=1e-4, rtol=1e-4))
    ok &= bool(jnp.allclose(cl_p, cl_r, atol=1e-4, rtol=1e-4))

  # Standalone tie_literals kernel, all flag combinations, including a row
  # count (26) that is not a multiple of the tile (partial-block path).
  for n_lits in (16, 26):
    embs = jax.random.normal(k_embs, (n_lits, settings["vemb_dim"]), jnp.float32)
    for interleaved in (True, False):
      for concat_origin in (True, False):
        got = jax.block_until_ready(
            DGLEncoder.tie_literals(embs, interleaved=interleaved,
                                    concat_origin=concat_origin))
        want = tie_literals_ref(embs, interleaved, concat_origin)
        ok &= (got.shape == want.shape) and bool(jnp.allclose(got, want))

  print("KERNEL_OK" if ok else "KERNEL_MISMATCH")
</pallas_src>

<mosaic_0001>
module attributes {stable_mosaic.version = 11 : i64} {
  func.func @_gin_fused_lupdate_kernel(%arg0: i32, %arg1: memref<1x1xf32, #tpu.memory_space<smem>>, %arg2: memref<4x128xf32, #tpu.memory_space<vmem>>, %arg3: memref<4x128xf32, #tpu.memory_space<vmem>>, %arg4: memref<128x128xf32, #tpu.memory_space<vmem>>, %arg5: memref<1x128xf32, #tpu.memory_space<vmem>>, %arg6: memref<128x128xf32, #tpu.memory_space<vmem>>, %arg7: memref<1x128xf32, #tpu.memory_space<vmem>>, %arg8: memref<128x128xf32, #tpu.memory_space<vmem>>, %arg9: memref<1x128xf32, #tpu.memory_space<vmem>>, %arg10: memref<1x128xf32, #tpu.memory_space<vmem>>, %arg11: memref<4x128xf32, #tpu.memory_space<vmem>>) attributes {dimension_semantics = [#tpu.dimension_semantics<parallel>], iteration_bounds = array<i64: 1>, scalar_prefetch = 0 : i64, scratch_operands = 0 : i64, tpu.core_type = #tpu.core_type<tc>, window_params = [{transform_indices = @transform_0, window_bounds = array<i64: 1, 1>}, {transform_indices = @transform_1, window_bounds = array<i64: 4, 128>}, {transform_indices = @transform_2, window_bounds = array<i64: 4, 128>}, {pipeline_mode = #tpu.pipeline_mode<synchronous>, transform_indices = @transform_3, window_bounds = array<i64: 128, 128>}, {pipeline_mode = #tpu.pipeline_mode<synchronous>, transform_indices = @transform_4, window_bounds = array<i64: 1, 128>}, {pipeline_mode = #tpu.pipeline_mode<synchronous>, transform_indices = @transform_5, window_bounds = array<i64: 128, 128>}, {pipeline_mode = #tpu.pipeline_mode<synchronous>, transform_indices = @transform_6, window_bounds = array<i64: 1, 128>}, {pipeline_mode = #tpu.pipeline_mode<synchronous>, transform_indices = @transform_7, window_bounds = array<i64: 128, 128>}, {pipeline_mode = #tpu.pipeline_mode<synchronous>, transform_indices = @transform_8, window_bounds = array<i64: 1, 128>}, {pipeline_mode = #tpu.pipeline_mode<synchronous>, transform_indices = @transform_9, window_bounds = array<i64: 1, 128>}, {transform_indices = @transform_10, window_bounds = array<i64: 4, 128>}]} {
    %c0 = arith.constant 0 : index
    %c0_0 = arith.constant 0 : index
    %0 = memref.load %arg1[%c0, %c0_0] : memref<1x1xf32, #tpu.memory_space<smem>>
    %c0_1 = arith.constant 0 : index
    %c0_2 = arith.constant 0 : index
    %1 = vector.load %arg2[%c0_1, %c0_2] : memref<4x128xf32, #tpu.memory_space<vmem>>, vector<4x128xf32>
    %2 = vector.broadcast %0 : f32 to vector<4x128xf32>
    %3 = arith.mulf %1, %2 : vector<4x128xf32>
    %c0_3 = arith.constant 0 : index
    %c0_4 = arith.constant 0 : index
    %4 = vector.load %arg3[%c0_3, %c0_4] : memref<4x128xf32, #tpu.memory_space<vmem>>, vector<4x128xf32>
    %5 = arith.addf %3, %4 : vector<4x128xf32>
    %c0_5 = arith.constant 0 : index
    %c0_6 = arith.constant 0 : index
    %6 = vector.load %arg4[%c0_5, %c0_6] : memref<128x128xf32, #tpu.memory_space<vmem>>, vector<128x128xf32>
    %cst = arith.constant dense<0.000000e+00> : vector<4x128xf32>
    %7 = tpu.matmul %5, %6, %cst {dimension_numbers = #tpu.dot_dimension_numbers<[1], [0], [0], [1], [0, 0, 1, 1], [], []>} : vector<4x128xf32>, vector<128x128xf32>, vector<4x128xf32> -> vector<4x128xf32>
    %c0_7 = arith.constant 0 : index
    %c0_8 = arith.constant 0 : index
    %8 = vector.load %arg5[%c0_7, %c0_8] : memref<1x128xf32, #tpu.memory_space<vmem>>, vector<1x128xf32>
    %9 = vector.broadcast %8 : vector<1x128xf32> to vector<4x128xf32>
    %10 = arith.addf %7, %9 : vector<4x128xf32>
    %cst_9 = arith.constant 0.000000e+00 : f32
    %11 = vector.broadcast %cst_9 : f32 to vector<4x128xf32>
    %12 = arith.maximumf %10, %11 : vector<4x128xf32>
    %c0_10 = arith.constant 0 : index
    %c0_11 = arith.constant 0 : index
    %13 = vector.load %arg6[%c0_10, %c0_11] : memref<128x128xf32, #tpu.memory_space<vmem>>, vector<128x128xf32>
    %cst_12 = arith.constant dense<0.000000e+00> : vector<4x128xf32>
    %14 = tpu.matmul %12, %13, %cst_12 {dimension_numbers = #tpu.dot_dimension_numbers<[1], [0], [0], [1], [0, 0, 1, 1], [], []>} : vector<4x128xf32>, vector<128x128xf32>, vector<4x128xf32> -> vector<4x128xf32>
    %c0_13 = arith.constant 0 : index
    %c0_14 = arith.constant 0 : index
    %15 = vector.load %arg7[%c0_13, %c0_14] : memref<1x128xf32, #tpu.memory_space<vmem>>, vector<1x128xf32>
    %16 = vector.broadcast %15 : vector<1x128xf32> to vector<4x128xf32>
    %17 = arith.addf %14, %16 : vector<4x128xf32>
    %c0_15 = arith.constant 0 : index
    %c0_16 = arith.constant 0 : index
    %18 = vector.load %arg8[%c0_15, %c0_16] : memref<128x128xf32, #tpu.memory_space<vmem>>, vector<128x128xf32>
    %cst_17 = arith.constant dense<0.000000e+00> : vector<4x128xf32>
    %19 = tpu.matmul %17, %18, %cst_17 {dimension_numbers = #tpu.dot_dimension_numbers<[1], [0], [0], [1], [0, 0, 1, 1], [], []>} : vector<4x128xf32>, vector<128x128xf32>, vector<4x128xf32> -> vector<4x128xf32>
    %20 = arith.subf %17, %19 : vector<4x128xf32>
    %21 = arith.mulf %20, %20 : vector<4x128xf32>
    %c0_18 = arith.constant 0 : index
    %c0_19 = arith.constant 0 : index
    %22 = vector.load %arg8[%c0_18, %c0_19] : memref<128x128xf32, #tpu.memory_space<vmem>>, vector<128x128xf32>
    %cst_20 = arith.constant dense<0.000000e+00> : vector<4x128xf32>
    %23 = tpu.matmul %21, %22, %cst_20 {dimension_numbers = #tpu.dot_dimension_numbers<[1], [0], [0], [1], [0, 0, 1, 1], [], []>} : vector<4x128xf32>, vector<128x128xf32>, vector<4x128xf32> -> vector<4x128xf32>
    %cst_21 = arith.constant 9.99999974E-6 : f32
    %24 = vector.broadcast %cst_21 : f32 to vector<4x128xf32>
    %25 = arith.addf %23, %24 : vector<4x128xf32>
    %26 = math.rsqrt %25 : vector<4x128xf32>
    %27 = arith.mulf %20, %26 : vector<4x128xf32>
    %c0_22 = arith.constant 0 : index
    %c0_23 = arith.constant 0 : index
    %28 = vector.load %arg9[%c0_22, %c0_23] : memref<1x128xf32, #tpu.memory_space<vmem>>, vector<1x128xf32>
    %29 = vector.broadcast %28 : vector<1x128xf32> to vector<4x128xf32>
    %30 = arith.mulf %27, %29 : vector<4x128xf32>
    %c0_24 = arith.constant 0 : index
    %c0_25 = arith.constant 0 : index
    %31 = vector.load %arg10[%c0_24, %c0_25] : memref<1x128xf32, #tpu.memory_space<vmem>>, vector<1x128xf32>
    %32 = vector.broadcast %31 : vector<1x128xf32> to vector<4x128xf32>
    %33 = arith.addf %30, %32 : vector<4x128xf32>
    %c0_26 = arith.constant 0 : index
    %c0_27 = arith.constant 0 : index
    %34 = vector.load %arg11[%c0_26, %c0_27] : memref<4x128xf32, #tpu.memory_space<vmem>>, vector<4x128xf32>
    tpu.vector_store %arg11[%c0_26, %c0_27], %33 {strides = array<i32>} : memref<4x128xf32, #tpu.memory_space<vmem>>, vector<4x128xf32>,
    return
  }
  func.func @transform_0(%arg0: i32) -> (i32, i32) {
    %c0_i32 = arith.constant 0 : i32
    %c0_i32_0 = arith.constant 0 : i32
    %c0_i32_1 = arith.constant 0 : i32
    return %c0_i32, %c0_i32_0 : i32, i32
  }
  func.func @transform_1(%arg0: i32) -> (i32, i32) {
    %c0_i32 = arith.constant 0 : i32
    %c0_i32_0 = arith.constant 0 : i32
    return %arg0, %c0_i32 : i32, i32
  }
  func.func @transform_2(%arg0: i32) -> (i32, i32) {
    %c0_i32 = arith.constant 0 : i32
    %c0_i32_0 = arith.constant 0 : i32
    return %arg0, %c0_i32 : i32, i32
  }
  func.func @transform_3(%arg0: i32) -> (i32, i32) {
    %c0_i32 = arith.constant 0 : i32
    %c0_i32_0 = arith.constant 0 : i32
    %c0_i32_1 = arith.constant 0 : i32
    return %c0_i32, %c0_i32_0 : i32, i32
  }
  func.func @transform_4(%arg0: i32) -> (i32, i32) {
    %c0_i32 = arith.constant 0 : i32
    %c0_i32_0 = arith.constant 0 : i32
    %c0_i32_1 = arith.constant 0 : i32
    return %c0_i32, %c0_i32_0 : i32, i32
  }
  func.func @transform_5(%arg0: i32) -> (i32, i32) {
    %c0_i32 = arith.constant 0 : i32
    %c0_i32_0 = arith.constant 0 : i32
    %c0_i32_1 = arith.constant 0 : i32
    return %c0_i32, %c0_i32_0 : i32, i32
  }
  func.func @transform_6(%arg0: i32) -> (i32, i32) {
    %c0_i32 = arith.constant 0 : i32
    %c0_i32_0 = arith.constant 0 : i32
    %c0_i32_1 = arith.constant 0 : i32
    return %c0_i32, %c0_i32_0 : i32, i32
  }
  func.func @transform_7(%arg0: i32) -> (i32, i32) {
    %c0_i32 = arith.constant 0 : i32
    %c0_i32_0 = arith.constant 0 : i32
    %c0_i32_1 = arith.constant 0 : i32
    return %c0_i32, %c0_i32_0 : i32, i32
  }
  func.func @transform_8(%arg0: i32) -> (i32, i32) {
    %c0_i32 = arith.constant 0 : i32
    %c0_i32_0 = arith.constant 0 : i32
    %c0_i32_1 = arith.constant 0 : i32
    return %c0_i32, %c0_i32_0 : i32, i32
  }
  func.func @transform_9(%arg0: i32) -> (i32, i32) {
    %c0_i32 = arith.constant 0 : i32
    %c0_i32_0 = arith.constant 0 : i32
    %c0_i32_1 = arith.constant 0 : i32
    return %c0_i32, %c0_i32_0 : i32, i32
  }
  func.func @transform_10(%arg0: i32) -> (i32, i32) {
    %c0_i32 = arith.constant 0 : i32
    %c0_i32_0 = arith.constant 0 : i32
    return %arg0, %c0_i32 : i32, i32
  }
}

</mosaic_0001>

<bundles_post_ra>
// kernel: tile.23
= control target key start
LH: loop header
LB: loop body
LE: loop exit
PB: predicated region body
PF: predicated region fallthrough
CT: control target
= control target key end

     0   :  { %s22_s0 = inlined_call_operand.vmem [shape: f32[32], index: 0, kind: input, shape index: {}]   ;;  %s23_s1 = inlined_call_operand.vmem [shape: f32[4,32], index: 1, kind: output, shape index: {}]  }
   0x1   :  { %v4_v0 = vld [vmem:[%s22_s0] ss:$0 sm:$0xff] }
   0x2   :  { %5 = vst [vmem:[%s23_s1] sm:$0xf] %v4_v0 }

// kernel: tile.24
= control target key start
LH: loop header
LB: loop body
LE: loop exit
PB: predicated region body
PF: predicated region fallthrough
CT: control target
= control target key end

     0   :  { %vm8_vm0 = vcmask 261120   ;;  %s40_s8 = smov 32   ;;  %s41_s9 = smov 64   ;;  %vm14_vm1 = vcmask 1048320   ;;  %vm20_vm2 = vcmask 785920   ;;  %vm26_vm3 = vcmask 523520   ;;  %s58_s0 = inlined_call_operand.vmem [shape: f32[4,32], index: 0, kind: input, shape index: {}]   ;;  %s59_s1 = inlined_call_operand.vmem [shape: f32[1,128], index: 1, kind: output, shape index: {}]  }
   0x1   :  { %v5_v0 = vld [vmem:[%s58_s0] sm:$0xf]  ;;  %s39_s0 = smov 96  }
   0x2   :  { %6 = vst [vmem:[#allocation1] sm:$0xf] %v5_v0 }
   0x9   :  { %v11_v1 = vld [vmem:[#allocation1 + $0x3] sm:$0x1]   ;;  %v23_v2 = vld [vmem:[#allocation1 + $0x1] sm:$0x1]   ;;  %v7_v3 = vld [vmem:[#allocation1] sm:$0x1]  }
   0xa   :  { %12 = vrot.lane.b32.xlu0 %v11_v1, %s39_s0  ;;  %24 = vrot.lane.b32.xlu1 %v23_v2, %s40_s8  ;;  %v17_v4 = vld [vmem:[#allocation1 + $0x2] sm:$0x1]   ;;  %9 = vst.msk [vmem:[#allocation0] sm:$0x1] %vm8_vm0, %v7_v3  }
   0xe   :  { %18 = vrot.lane.b32.xlu0 %v17_v4, %s41_s9 }
  0x7c   :  { %v13_v5 = vpop.permute.xlu0 %12   ;;  %v25_v6 = vpop.permute.xlu1 %24  }
  0x7d   :  { %15 = vst.msk [vmem:[#allocation0] sm:$0x1] %vm14_vm1, %v13_v5  }
  0x80   :  { %v19_v7 = vpop.permute.xlu0 %18  }
  0x81   :  { %21 = vst.msk [vmem:[#allocation0] sm:$0x1] %vm20_vm2, %v19_v7  }
  0x82   :  { %27 = vst.msk [vmem:[#allocation0] sm:$0x1] %vm26_vm3, %v25_v6  }
  0x89   :  { %v32_v8 = vld [vmem:[#allocation0] sm:$0x1] }
  0x8a   :  { %35 = vst [vmem:[%s59_s1] sm:$0x1] %v32_v8 }

// kernel: gin_fused_literal_update.1
= control target key start
LH: loop header
LB: loop body
LE: loop exit
PB: predicated region body
PF: predicated region fallthrough
CT: control target
= control target key end

     0   :  { %v626_v0 = vmov 0.0   ;;  %vm627_vm0 = vmmov 0   ;;  %s923_s3 = inlined_call_operand.vmem [shape: f32[128,128], index: 3, kind: input, shape index: {}]   ;;  %s924_s5 = inlined_call_operand.vmem [shape: f32[128,128], index: 5, kind: input, shape index: {}]   ;;  %s925_s0 = inlined_call_operand.<no memory space> [shape: f32[1,1], index: 0, kind: input, shape index: {}]   ;;  %s926_s1 = inlined_call_operand.vmem [shape: f32[4,128], index: 1, kind: input, shape index: {}]   ;;  %s927_s2 = inlined_call_operand.vmem [shape: f32[4,128], index: 2, kind: input, shape index: {}]   ;;  %s928_s7 = inlined_call_operand.vmem [shape: f32[128,128], index: 7, kind: input, shape index: {}]   ;;  %s929_s4 = inlined_call_operand.vmem [shape: f32[1,128], index: 4, kind: input, shape index: {}]   ;;  %s930_s6 = inlined_call_operand.vmem [shape: f32[1,128], index: 6, kind: input, shape index: {}]   ;;  %s931_s8 = inlined_call_operand.vmem [shape: f32[1,128], index: 8, kind: input, shape index: {}]   ;;  %s932_s9 = inlined_call_operand.vmem [shape: f32[1,128], index: 9, kind: input, shape index: {}]   ;;  %s933_s10 = inlined_call_operand.vmem [shape: f32[4,128], index: 10, kind: output, shape index: {}]  }
   0x1   :  { %482 = vmatprep.subr.mxu0 %v626_v0  ;;  %v57_v1 = vld [vmem:[%s923_s3 + $0x78] sm:$0xff]  ;;  %v56_v2 = vld [vmem:[%s923_s3 + $0x70] sm:$0xff]  ;;  %514 = vmatprep.mubr.msk.f32.mxu0 %vm627_vm0, %v626_v0  ;;  %v55_v3 = vld [vmem:[%s923_s3 + $0x68] sm:$0xff]  ;;  %v38_v23 = vstv %s925_s0 }
   0x2   :  { %483 = vmatpush3.msra.mxu0 %v57_v1  ;;  %517 = vmatprep.subr.mxu1 %v626_v0  ;;  %v54_v4 = vld [vmem:[%s923_s3 + $0x60] sm:$0xff]  ;;  %v53_v5 = vld [vmem:[%s923_s3 + $0x58] sm:$0xff]  ;;  %v150_v7 = vld [vmem:[%s924_s5 + $0x70] sm:$0xff] }
   0x3   :  { %484 = vmatprep.subr.mxu0 %v626_v0  ;;  %549 = vmatprep.mubr.msk.f32.mxu1 %vm627_vm0, %v626_v0  ;;  %v151_v6 = vld [vmem:[%s924_s5 + $0x78] sm:$0xff]  ;;  %v52_v8 = vld [vmem:[%s923_s3 + $0x50] sm:$0xff]  ;;  %v149_v9 = vld [vmem:[%s924_s5 + $0x68] sm:$0xff] }
   0x4   :  { %485 = vmatpush3.msra.mxu0 %v56_v2  ;;  %518 = vmatpush3.msra.mxu1 %v151_v6  ;;  %v51_v10 = vld [vmem:[%s923_s3 + $0x48] sm:$0xff]  ;;  %v148_v11 = vld [vmem:[%s924_s5 + $0x60] sm:$0xff]  ;;  %v147_v13 = vld [vmem:[%s924_s5 + $0x58] sm:$0xff] }
   0x5   :  { %486 = vmatprep.subr.mxu0 %v626_v0  ;;  %519 = vmatprep.subr.mxu1 %v626_v0  ;;  %v50_v12 = vld [vmem:[%s923_s3 + $0x40] sm:$0xff]  ;;  %v49_v14 = vld [vmem:[%s923_s3 + $0x38] sm:$0xff]  ;;  %v146_v15 = vld [vmem:[%s924_s5 + $0x50] sm:$0xff] }
   0x6   :  { %487 = vmatpush3.msra.mxu0 %v55_v3  ;;  %520 = vmatpush3.msra.mxu1 %v150_v7  ;;  %v48_v16 = vld [vmem:[%s923_s3 + $0x30] sm:$0xff]  ;;  %v145_v17 = vld [vmem:[%s924_s5 + $0x48] sm:$0xff]  ;;  %v144_v19 = vld [vmem:[%s924_s5 + $0x40] sm:$0xff] }
   0x7   :  { %488 = vmatprep.subr.mxu0 %v626_v0  ;;  %521 = vmatprep.subr.mxu1 %v626_v0  ;;  %v47_v18 = vld [vmem:[%s923_s3 + $0x28] sm:$0xff]  ;;  %v46_v20 = vld [vmem:[%s923_s3 + $0x20] sm:$0xff]  ;;  %v143_v21 = vld [vmem:[%s924_s5 + $0x38] sm:$0xff] }
   0x8   :  { %489 = vmatpush3.msra.mxu0 %v54_v4  ;;  %522 = vmatpush3.msra.mxu1 %v149_v9  ;;  %v37_v22 = vld [vmem:[%s926_s1] sm:$0xf]  ;;  %v45_v24 = vld [vmem:[%s923_s3 + $0x18] sm:$0xff]  ;;  %v142_v25 = vld [vmem:[%s924_s5 + $0x30] sm:$0xff] }
   0x9   :  { %490 = vmatprep.subr.mxu0 %v626_v0  ;;  %523 = vmatprep.subr.mxu1 %v626_v0  ;;  %v44_v26 = vld [vmem:[%s923_s3 + $0x10] sm:$0xff]  ;;  %v39_v27 = vmul.f32 %v38_v23, %v37_v22  ;;  %v141_v28 = vld [vmem:[%s924_s5 + $0x28] sm:$0xff]  ;;  %v40_v29 = vld [vmem:[%s927_s2] sm:$0xf] }
   0xa   :  { %491 = vmatpush3.msra.mxu0 %v53_v5  ;;  %524 = vmatpush3.msra.mxu1 %v148_v11  ;;  %v43_v30 = vld [vmem:[%s923_s3 + $0x8] sm:$0xff]  ;;  %v140_v31 = vld [vmem:[%s924_s5 + $0x20] sm:$0xff]  ;;  %v139_v34 = vld [vmem:[%s924_s5 + $0x18] sm:$0xff] }
   0xb   :  { %492 = vmatprep.subr.mxu0 %v626_v0  ;;  %525 = vmatprep.subr.mxu1 %v626_v0  ;;  %v42_v32 = vld [vmem:[%s923_s3] sm:$0xff]  ;;  %v41_v33 = vadd.f32 %v40_v29, %v39_v27  ;;  %v138_v35 = vld [vmem:[%s924_s5 + $0x10] sm:$0xff]  ;;  %v137_v36 = vld [vmem:[%s924_s5 + $0x8] sm:$0xff] }
   0xc   :  { %493 = vmatpush3.msra.mxu0 %v52_v8  ;;  %526 = vmatpush3.msra.mxu1 %v147_v13  ;;  %v136_v37 = vld [vmem:[%s924_s5] sm:$0xff]  ;;  %v244_v38 = vld [vmem:[%s928_s7 + $0x78] sm:$0xff]  ;;  %v243_v39 = vld [vmem:[%s928_s7 + $0x70] sm:$0xff] }
   0xd   :  { %494 = vmatprep.subr.mxu0 %v626_v0  ;;  %527 = vmatprep.subr.mxu1 %v626_v0  ;;  %v242_v40 = vld [vmem:[%s928_s7 + $0x68] sm:$0xff]  ;;  %v241_v41 = vld [vmem:[%s928_s7 + $0x60] sm:$0xff]  ;;  %v240_v42 = vld [vmem:[%s928_s7 + $0x58] sm:$0xff] }
   0xe   :  { %495 = vmatpush3.msra.mxu0 %v51_v10  ;;  %528 = vmatpush3.msra.mxu1 %v146_v15  ;;  %v239_v43 = vld [vmem:[%s928_s7 + $0x50] sm:$0xff]  ;;  %v238_v44 = vld [vmem:[%s928_s7 + $0x48] sm:$0xff]  ;;  %v237_v45 = vld [vmem:[%s928_s7 + $0x40] sm:$0xff] }
   0xf   :  { %496 = vmatprep.subr.mxu0 %v626_v0  ;;  %529 = vmatprep.subr.mxu1 %v626_v0  ;;  %v236_v46 = vld [vmem:[%s928_s7 + $0x38] sm:$0xff]  ;;  %v235_v47 = vld [vmem:[%s928_s7 + $0x30] sm:$0xff]  ;;  %v234_v48 = vld [vmem:[%s928_s7 + $0x28] sm:$0xff] }
  0x10   :  { %497 = vmatpush3.msra.mxu0 %v50_v12  ;;  %530 = vmatpush3.msra.mxu1 %v145_v17  ;;  %v233_v49 = vld [vmem:[%s928_s7 + $0x20] sm:$0xff]  ;;  %v232_v50 = vld [vmem:[%s928_s7 + $0x18] sm:$0xff]  ;;  %v231_v51 = vld [vmem:[%s928_s7 + $0x10] sm:$0xff] }
  0x11   :  { %498 = vmatprep.subr.mxu0 %v626_v0  ;;  %531 = vmatprep.subr.mxu1 %v626_v0  ;;  %v410_v52 = vld [vmem:[%s929_s4] ss:$0 sm:$0xff]  ;;  %v230_v57 = vld [vmem:[%s928_s7 + $0x8] sm:$0xff] }
  0x12   :  { %499 = vmatpush3.msra.mxu0 %v49_v14  ;;  %532 = vmatpush3.msra.mxu1 %v144_v19  ;;  %v229_v58 = vld [vmem:[%s928_s7] sm:$0xff] }
  0x13   :  { %500 = vmatprep.subr.mxu0 %v626_v0  ;;  %533 = vmatprep.subr.mxu1 %v626_v0  ;;  %v411_v59 = vld [vmem:[%s930_s6] ss:$0 sm:$0xff] }
  0x14   :  { %501 = vmatpush3.msra.mxu0 %v48_v16  ;;  %534 = vmatpush3.msra.mxu1 %v143_v21  ;;  %v412_v7 = vld [vmem:[%s931_s8] ss:$0 sm:$0xff] }
  0x15   :  { %502 = vmatprep.subr.mxu0 %v626_v0  ;;  %535 = vmatprep.subr.mxu1 %v626_v0  ;;  %v413_v9 = vld [vmem:[%s932_s9] ss:$0 sm:$0xff] }
  0x16   :  { %503 = vmatpush3.msra.mxu0 %v47_v18  ;;  %536 = vmatpush3.msra.mxu1 %v142_v25 }
  0x17   :  { %504 = vmatprep.subr.mxu0 %v626_v0  ;;  %537 = vmatprep.subr.mxu1 %v626_v0 }
  0x18   :  { %505 = vmatpush3.msra.mxu0 %v46_v20  ;;  %538 = vmatpush3.msra.mxu1 %v141_v28 }
  0x19   :  { %506 = vmatprep.subr.mxu0 %v626_v0  ;;  %539 = vmatprep.subr.mxu1 %v626_v0 }
  0x1a   :  { %507 = vmatpush3.msra.mxu0 %v45_v24  ;;  %540 = vmatpush3.msra.mxu1 %v140_v31 }
  0x1b   :  { %508 = vmatprep.subr.mxu0 %v626_v0  ;;  %541 = vmatprep.subr.mxu1 %v626_v0 }
  0x1c   :  { %509 = vmatpush3.msra.mxu0 %v44_v26  ;;  %542 = vmatpush3.msra.mxu1 %v139_v34 }
  0x1d   :  { %510 = vmatprep.subr.mxu0 %v626_v0  ;;  %543 = vmatprep.subr.mxu1 %v626_v0 }
  0x1e   :  { %511 = vmatpush3.msra.mxu0 %v43_v30  ;;  %544 = vmatpush3.msra.mxu1 %v138_v35 }
  0x1f   :  { %512 = vmatprep.subr.mxu0 %v626_v0  ;;  %545 = vmatprep.subr.mxu1 %v626_v0 }
  0x20   :  { %513 = vmatpush3.msra.mxu0 %v42_v32  ;;  %546 = vmatpush3.msra.mxu1 %v137_v36 }
  0x21   :  { %515 = vmatmul.mubr.f32.vlgmr.msra.gmra.mxu0 %v41_v33  ;;  %552 = vmatprep.subr.mxu0 %v626_v0 }
  0x22   :  { %584 = vmatprep.mubr.msk.f32.mxu0 %vm627_vm0, %v626_v0  ;;  %547 = vmatprep.subr.mxu1 %v626_v0 }
  0x23   :  { %548 = vmatpush3.msra.mxu1 %v136_v37  ;;  %553 = vmatpush3.msra.mxu0 %v244_v38 }
  0x24   :  { %587 = vmatprep.subr.mxu1 %v626_v0  ;;  %554 = vmatprep.subr.mxu0 %v626_v0 }
  0x25   :  { %555 = vmatpush3.msra.mxu0 %v243_v39 }
  0x26   :  { %556 = vmatprep.subr.mxu0 %v626_v0 }
  0x27   :  { %557 = vmatpush3.msra.mxu0 %v242_v40 }
  0x28   :  { %558 = vmatprep.subr.mxu0 %v626_v0 }
  0x29   :  { %559 = vmatpush3.msra.mxu0 %v241_v41 }
  0x2a   :  { %560 = vmatprep.subr.mxu0 %v626_v0 }
  0x2b   :  { %561 = vmatpush3.msra.mxu0 %v240_v42 }
  0x2c   :  { %562 = vmatprep.subr.mxu0 %v626_v0 }
  0x2d   :  { %563 = vmatpush3.msra.mxu0 %v239_v43 }
  0x2e   :  { %564 = vmatprep.subr.mxu0 %v626_v0 }
  0x2f   :  { %565 = vmatpush3.msra.mxu0 %v238_v44 }
  0x30   :  { %566 = vmatprep.subr.mxu0 %v626_v0 }
  0x31   :  { %567 = vmatpush3.msra.mxu0 %v237_v45 }
  0x32   :  { %568 = vmatprep.subr.mxu0 %v626_v0 }
  0x33   :  { %569 = vmatpush3.msra.mxu0 %v236_v46 }
  0x34   :  { %570 = vmatprep.subr.mxu0 %v626_v0 }
  0x35   :  { %571 = vmatpush3.msra.mxu0 %v235_v47 }
  0x36   :  { %572 = vmatprep.subr.mxu0 %v626_v0 }
  0x37   :  { %573 = vmatpush3.msra.mxu0 %v234_v48 }
  0x38   :  { %574 = vmatprep.subr.mxu0 %v626_v0 }
  0x39   :  { %575 = vmatpush3.msra.mxu0 %v233_v49 }
  0x3a   :  { %576 = vmatprep.subr.mxu0 %v626_v0 }
  0x3b   :  { %577 = vmatpush3.msra.mxu0 %v232_v50 }
  0x3c   :  { %578 = vmatprep.subr.mxu0 %v626_v0 }
  0x3d   :  { %579 = vmatpush3.msra.mxu0 %v231_v51 }
  0x3e   :  { %580 = vmatprep.subr.mxu0 %v626_v0 }
  0x3f   :  { %581 = vmatpush3.msra.mxu0 %v230_v57 }
  0x40   :  { %582 = vmatprep.subr.mxu0 %v626_v0 }
  0x41   :  { %583 = vmatpush3.msra.mxu0 %v229_v58 }
  0xe1   :  { %v131_v53 = vpop.f32.mrf.mxu0 }
  0xe2   :  { %v132_v54 = vadd.f32 %v410_v52, %v131_v53 }
  0xe3   :  { %v516_v55 = vpop.f32.mrf.mxu0 }
  0xe4   :  { %v135_v56 = vmax.f32 %v132_v54, 0.0 }
  0xe6   :  { %550 = vmatmul.mubr.f32.vlgmr.msra.gmra.mxu1 %v135_v56 }
  0xe7   :  { %588 = vmatpush3.msra.mxu1 %v244_v38  ;;  %619 = vmatprep.mubr.msk.f32.mxu1 %vm627_vm0, %v626_v0 }
  0xe8   :  { %589 = vmatprep.subr.mxu1 %v626_v0 }
  0xe9   :  { %590 = vmatpush3.msra.mxu1 %v243_v39 }
  0xea   :  { %591 = vmatprep.subr.mxu1 %v626_v0 }
  0xeb   :  { %592 = vmatpush3.msra.mxu1 %v242_v40 }
  0xec   :  { %593 = vmatprep.subr.mxu1 %v626_v0 }
  0xed   :  { %594 = vmatpush3.msra.mxu1 %v241_v41 }
  0xee   :  { %595 = vmatprep.subr.mxu1 %v626_v0 }
  0xef   :  { %596 = vmatpush3.msra.mxu1 %v240_v42 }
  0xf0   :  { %597 = vmatprep.subr.mxu1 %v626_v0 }
  0xf1   :  { %598 = vmatpush3.msra.mxu1 %v239_v43 }
  0xf2   :  { %599 = vmatprep.subr.mxu1 %v626_v0 }
  0xf3   :  { %600 = vmatpush3.msra.mxu1 %v238_v44 }
  0xf4   :  { %601 = vmatprep.subr.mxu1 %v626_v0 }
  0xf5   :  { %602 = vmatpush3.msra.mxu1 %v237_v45 }
  0xf6   :  { %603 = vmatprep.subr.mxu1 %v626_v0 }
  0xf7   :  { %604 = vmatpush3.msra.mxu1 %v236_v46 }
  0xf8   :  { %605 = vmatprep.subr.mxu1 %v626_v0 }
  0xf9   :  { %606 = vmatpush3.msra.mxu1 %v235_v47 }
  0xfa   :  { %607 = vmatprep.subr.mxu1 %v626_v0 }
  0xfb   :  { %608 = vmatpush3.msra.mxu1 %v234_v48 }
  0xfc   :  { %609 = vmatprep.subr.mxu1 %v626_v0 }
  0xfd   :  { %610 = vmatpush3.msra.mxu1 %v233_v49 }
  0xfe   :  { %611 = vmatprep.subr.mxu1 %v626_v0 }
  0xff   :  { %612 = vmatpush3.msra.mxu1 %v232_v50 }
 0x100   :  { %613 = vmatprep.subr.mxu1 %v626_v0 }
 0x101   :  { %614 = vmatpush3.msra.mxu1 %v231_v51 }
 0x102   :  { %615 = vmatprep.subr.mxu1 %v626_v0 }
 0x103   :  { %616 = vmatpush3.msra.mxu1 %v230_v57 }
 0x104   :  { %617 = vmatprep.subr.mxu1 %v626_v0 }
 0x105   :  { %618 = vmatpush3.msra.mxu1 %v229_v58 }
 0x1a6   :  { %v225_v60 = vpop.f32.mrf.mxu1 }
 0x1a7   :  { %v226_v61 = vadd.f32 %v411_v59, %v225_v60 }
 0x1a8   :  { %v551_v62 = vpop.f32.mrf.mxu1 }
 0x1a9   :  { %585 = vmatmul.mubr.f32.vlgmr.msra.gmra.mxu0 %v226_v61 }
 0x269   :  { %v311_v63 = vpop.f32.mrf.mxu0 }
 0x26a   :  { %v315_v1 = vsub.f32 %v226_v61, %v311_v63 }
 0x26b   :  { %v586_v2 = vpop.f32.mrf.mxu0 }
 0x26c   :  { %v316_v3 = vmul.f32 %v315_v1, %v315_v1 }
 0x26e   :  { %620 = vmatmul.mubr.f32.vlgmr.msra.gmra.mxu1 %v316_v3 }
 0x32e   :  { %v383_v4 = vpop.f32.mrf.mxu1 }
 0x32f   :  { %v384_v5 = vadd.f32 1e-05, %v383_v4 }
 0x330   :  { %v621_v6 = vpop.f32.mrf.mxu1 }
 0x331   :  { %624 = vrsqrt.f32 %v384_v5 }
 0x33e   :  { %v625_v0 = vpop.eup %624 }
 0x33f   :  { %v388_v8 = vmul.f32 %v625_v0, %v315_v1 }
 0x341   :  { %v396_v10 = vmul.f32 %v412_v7, %v388_v8 }
 0x343   :  { %v404_v11 = vadd.f32 %v413_v9, %v396_v10 }
 0x345   :  { %405 = vst [vmem:[%s933_s10] sm:$0xf] %v404_v11 }

</bundles_post_ra>
